<compile_context>
chip_gen: v5e
topology: v5e:2x2
jax: 0.10.0
libtpu: 0.0.40
codegen_flags: <defaults>
</compile_context>

<pallas_src>
import functools

import jax
import jax.numpy as jnp
import numpy as np
from jax import lax
from jax.experimental import pallas as pl
from jax.experimental.pallas import tpu as pltpu


MASK_VALUE = float(np.finfo(np.float32).min)


def _choose_tile(dim, candidates):
    """Largest candidate tile that evenly divides `dim`; else fall back to the full
    dim (a full-extent block always satisfies the (8,128) rule)."""
    for c in candidates:
        if c <= dim and dim % c == 0:
            return c
    return dim


# ------------------------- tiled linear kernel -------------------------

def _linear_kernel(x_ref, w_ref, o_ref, acc_ref):
    @pl.when(pl.program_id(2) == 0)
    def _init():
        acc_ref[...] = jnp.zeros_like(acc_ref)

    acc_ref[...] += jnp.dot(x_ref[...], w_ref[...],
                            preferred_element_type=jnp.float32)

    @pl.when(pl.program_id(2) == pl.num_programs(2) - 1)
    def _store():
        o_ref[...] = acc_ref[...].astype(o_ref.dtype)


def pallas_linear(x, w):
    """x: (M, K), w: (K, N) -> (M, N), tiled + pipelined."""
    M, K = x.shape
    K2, N = w.shape
    assert K == K2
    bm = _choose_tile(M, (512, 256, 128, 64, 32, 16, 8))   # multiples of 8
    bn = _choose_tile(N, (512, 256, 128))                   # multiples of 128
    bk = _choose_tile(K, (512, 256, 128))                   # multiples of 128
    grid = (M // bm, N // bn, K // bk)

    itemsize = np.dtype(x.dtype).itemsize
    cost = pl.CostEstimate(
        flops=2 * M * N * K,
        transcendentals=0,
        bytes_accessed=itemsize * (M * K + K * N + M * N))

    return pl.pallas_call(
        _linear_kernel,
        out_shape=jax.ShapeDtypeStruct((M, N), x.dtype),
        grid=grid,
        in_specs=[pl.BlockSpec((bm, bk), lambda i, j, k: (i, k)),
                  pl.BlockSpec((bk, bn), lambda i, j, k: (k, j))],
        out_specs=pl.BlockSpec((bm, bn), lambda i, j, k: (i, j)),
        scratch_shapes=[pltpu.VMEM((bm, bn), jnp.float32)],
        compiler_params=pltpu.CompilerParams(
            dimension_semantics=("parallel", "parallel", "arbitrary")),
        cost_estimate=cost,
    )(x, w)


# ------------------------- flash causal attention kernel -------------------------

def _mha_flash_kernel(q_ref, k_ref, v_ref, o_ref,
                      q_sc, m_sc, l_sc, acc_sc, *,
                      tq, tk, scale_inv, num_heads, head_dim):
    qi = pl.program_id(1)
    ki = pl.program_id(2)
    nk = pl.num_programs(2)

    @pl.when(ki == 0)
    def _init():
        # Cache the (already head-major) q tile in f32, scaled once per q tile.
        q_sc[...] = q_ref[0].astype(jnp.float32) * scale_inv      # (H, tq, Dh)
        m_sc[...] = jnp.full_like(m_sc, -jnp.inf)
        l_sc[...] = jnp.zeros_like(l_sc)
        acc_sc[...] = jnp.zeros_like(acc_sc)

    # Skip KV tiles lying entirely above the causal diagonal (fully masked).
    @pl.when(ki * tk <= qi * tq + (tq - 1))
    def _compute():
        k = k_ref[0].astype(jnp.float32)                           # (H, tk, Dh)
        v = v_ref[0]                                               # (H, tk, Dh)

        # scores (H, tq, tk), f32 accumulation on the MXU (batched over heads).
        s = jnp.einsum("hqd,hkd->hqk", q_sc[...], k,
                       preferred_element_type=jnp.float32)

        # tile-local causal mask derived from tile offsets (no full TxT iota).
        row = qi * tq + lax.broadcasted_iota(jnp.int32, (tq, tk), 0)
        col = ki * tk + lax.broadcasted_iota(jnp.int32, (tq, tk), 1)
        s = jnp.where((col <= row)[None, :, :], s, MASK_VALUE)

        m_prev = m_sc[...]                                         # (H, tq, 1)
        m_new = jnp.maximum(m_prev, jnp.max(s, axis=-1, keepdims=True))
        alpha = jnp.exp(m_prev - m_new)
        p = jnp.exp(s - m_new)                                     # (H, tq, tk)

        l_sc[...] = alpha * l_sc[...] + jnp.sum(p, axis=-1, keepdims=True)
        pv = jnp.einsum("hqk,hkd->hqd", p.astype(v.dtype), v,
                        preferred_element_type=jnp.float32)        # (H, tq, Dh)
        acc_sc[...] = alpha * acc_sc[...] + pv
        m_sc[...] = m_new

    @pl.when(ki == nk - 1)
    def _finalize():
        # Normalize once on the (H, tq, Dh) accumulator (not on the TxT probs);
        # reciprocal goes to the EUP slot.
        inv_l = pl.reciprocal(l_sc[...], approx=True)              # (H, tq, 1)
        o = (acc_sc[...] * inv_l).astype(o_ref.dtype)              # (H, tq, Dh)
        # Merge heads in-kernel: write a lane-dense (tq, H*Dh) slab.
        for h in range(num_heads):
            o_ref[0, :, h * head_dim:(h + 1) * head_dim] = o[h]


def pallas_flash_mha(query, key, value, scale):
    """query/key/value: (B, H, T, Dh) head-major layout.
    Returns merged-head output (B, T, H*Dh)."""
    B, H, T, Dh = query.shape
    tq = _choose_tile(T, (256, 128, 64, 32, 16, 8))
    tk = _choose_tile(T, (512, 256, 128, 64, 32, 16, 8))
    nq, nk = T // tq, T // tk
    scale_inv = 1.0 / float(scale)

    def q_block(b, qi, ki):
        return (b, 0, qi, 0)

    def kv_block(b, qi, ki):
        # Clamp to the last KV tile this q tile needs, so skipped (fully masked)
        # grid steps re-use the resident block instead of issuing a useless DMA.
        last = (qi * tq + (tq - 1)) // tk
        return (b, 0, jnp.minimum(ki, last), 0)

    q_spec = pl.BlockSpec((1, H, tq, Dh), q_block)
    k_spec = pl.BlockSpec((1, H, tk, Dh), kv_block)
    v_spec = pl.BlockSpec((1, H, tk, Dh), kv_block)
    o_spec = pl.BlockSpec((1, tq, H * Dh), lambda b, qi, ki: (b, qi, 0))

    kern = functools.partial(
        _mha_flash_kernel, tq=tq, tk=tk, scale_inv=scale_inv,
        num_heads=H, head_dim=Dh)

    itemsize = np.dtype(query.dtype).itemsize
    cost = pl.CostEstimate(
        flops=4 * B * H * T * T * Dh,
        transcendentals=B * H * T * T,
        bytes_accessed=itemsize * 4 * B * T * H * Dh)

    return pl.pallas_call(
        kern,
        out_shape=jax.ShapeDtypeStruct((B, T, H * Dh), query.dtype),
        grid=(B, nq, nk),
        in_specs=[q_spec, k_spec, v_spec],
        out_specs=o_spec,
        scratch_shapes=[
            pltpu.VMEM((H, tq, Dh), jnp.float32),   # cached, pre-scaled q tile
            pltpu.VMEM((H, tq, 1), jnp.float32),    # running max m
            pltpu.VMEM((H, tq, 1), jnp.float32),    # running denominator l
            pltpu.VMEM((H, tq, Dh), jnp.float32),   # output accumulator
        ],
        compiler_params=pltpu.CompilerParams(
            dimension_semantics=("parallel", "parallel", "arbitrary")),
        cost_estimate=cost,
    )(query, key, value)


# ------------------------- rotary helpers (glue, plain JAX) -------------------------

def fixed_pos_embedding(dim, seq_len):
    inv_freq = 1.0 / (10000.0 ** (jnp.arange(0, dim, 2, dtype=jnp.float32) / dim))
    sinusoid = jnp.einsum("i,j->ij", jnp.arange(seq_len, dtype=jnp.float32), inv_freq)
    return jnp.sin(sinusoid), jnp.cos(sinusoid)


def duplicate_interleave(m):
    # [a, b, c] -> [a, a, b, b, c, c]
    return jnp.repeat(m, 2, axis=-1)


def rotate_every_two(x):
    x1 = x[..., ::2]
    x2 = x[..., 1::2]
    y = jnp.stack((-x2, x1), axis=-1)
    return y.reshape(x.shape)


def apply_rotary_pos_emb(x, sincos, offset=0):
    sin, cos = (
        duplicate_interleave(t)[None, offset:x.shape[1] + offset, None, :] for t in sincos
    )
    return x * cos + rotate_every_two(x) * sin


# ------------------------- reference attention (plain JAX) -------------------------

def _reference_attention(q, k, v, scale):
    # q/k/v: (B, H, T, Dh) -> merged (B, T, H*Dh), matching the torch module.
    q = q.astype(jnp.float32)
    k = k.astype(jnp.float32)
    B, H, T, Dh = q.shape
    s = jnp.einsum("bhqd,bhkd->bhqk", q, k,
                   precision=lax.Precision.HIGHEST) / scale
    row = lax.broadcasted_iota(jnp.int32, (T, T), 0)
    col = lax.broadcasted_iota(jnp.int32, (T, T), 1)
    s = jnp.where((col <= row)[None, None], s, jnp.finfo(jnp.float32).min)
    p = jax.nn.softmax(s, axis=-1)
    o = jnp.einsum("bhqk,bhkd->bhqd", p.astype(v.dtype), v,
                   precision=lax.Precision.HIGHEST)
    o = jnp.transpose(o, (0, 2, 1, 3))
    return o.reshape(B, T, H * Dh)


# ------------------------- module forward -------------------------

def codet5p_attention_forward(hidden_states, params, *, num_heads, head_dim,
                              rotary_dim, use_pallas=True):
    B, T, E = hidden_states.shape
    mp_num = 4
    local_dim = head_dim * num_heads // mp_num

    def linear(x2d, w):
        if use_pallas:
            return pallas_linear(x2d, w)
        return jnp.dot(x2d, w, precision=lax.Precision.HIGHEST)

    # qkv projection (split order in the reference is: query, value, key)
    qkv = linear(hidden_states.reshape(B * T, E), params["w_qkv"]).reshape(B, T, 3 * E)
    qkv_split = qkv.reshape(B, T, mp_num, -1)
    query = qkv_split[..., 0 * local_dim:1 * local_dim]
    value = qkv_split[..., 1 * local_dim:2 * local_dim]
    key = qkv_split[..., 2 * local_dim:3 * local_dim]

    def split_heads(x):  # (B, T, mp, local) -> (B, T, H, Dh)  (contiguous reshape)
        return x.reshape(B, T, num_heads, head_dim)

    query, key, value = map(split_heads, (query, key, value))

    # rotary position embedding (no layer_past -> offset = 0, seq_len = T);
    # applied in the (B, T, H, Dh) layout, like the reference.
    if rotary_dim is not None:
        k_rot, k_pass = key[..., :rotary_dim], key[..., rotary_dim:]
        q_rot, q_pass = query[..., :rotary_dim], query[..., rotary_dim:]
        sincos = fixed_pos_embedding(rotary_dim, T)
        k_rot = apply_rotary_pos_emb(k_rot, sincos)
        q_rot = apply_rotary_pos_emb(q_rot, sincos)
        key = jnp.concatenate([k_rot, k_pass], axis=-1)
        query = jnp.concatenate([q_rot, q_pass], axis=-1)
    else:
        sincos = fixed_pos_embedding(head_dim, T)
        key = apply_rotary_pos_emb(key, sincos)
        query = apply_rotary_pos_emb(query, sincos)

    scale = float(np.sqrt(np.float32(head_dim)))

    # Head-major layout for attention (single XLA transpose in HBM, so the
    # kernel never transposes per tile); the kernel emits merged heads
    # (B, T, H*Dh) so no post-attention permute is needed before out_proj.
    q_hm = jnp.transpose(query, (0, 2, 1, 3))
    k_hm = jnp.transpose(key, (0, 2, 1, 3))
    v_hm = jnp.transpose(value, (0, 2, 1, 3))

    if use_pallas:
        attn_merged = pallas_flash_mha(q_hm, k_hm, v_hm, scale)
    else:
        attn_merged = _reference_attention(q_hm, k_hm, v_hm, scale)

    # output projection (attn/resid dropout is a no-op in eval mode)
    out = linear(attn_merged.reshape(B * T, E), params["w_out"]).reshape(B, T, E)
    return out


# ------------------------- main -------------------------

if __name__ == "__main__":
    # Small config consistent with the module: hidden=32, heads=4 (head_dim=8), rotary_dim=4.
    B, T, E = 2, 8, 32
    H, Dh = 4, 8
    ROTARY_DIM = 4

    key0 = jax.random.PRNGKey(0)
    k_h, k_qkv, k_out = jax.random.split(key0, 3)

    hidden_states = jax.random.normal(k_h, (B, T, E), dtype=jnp.float32)
    params = {
        # stored as (in_features, out_features), i.e. torch weight transposed
        "w_qkv": 0.02 * jax.random.normal(k_qkv, (E, 3 * E), dtype=jnp.float32),
        "w_out": 0.02 * jax.random.normal(k_out, (E, E), dtype=jnp.float32),
    }

    out = codet5p_attention_forward(
        hidden_states, params, num_heads=H, head_dim=Dh,
        rotary_dim=ROTARY_DIM, use_pallas=True)
    out = jax.block_until_ready(out)

    ref = codet5p_attention_forward(
        hidden_states, params, num_heads=H, head_dim=Dh,
        rotary_dim=ROTARY_DIM, use_pallas=False)
    ref = jax.block_until_ready(ref)

    np.testing.assert_allclose(np.asarray(out), np.asarray(ref), rtol=2e-2, atol=2e-2)
    print("KERNEL_OK")
</pallas_src>

<mosaic_0001>
module attributes {stable_mosaic.version = 11 : i64} {
  func.func @_linear_kernel(%arg0: i32, %arg1: i32, %arg2: i32, %arg3: memref<16x32xf32, #tpu.memory_space<vmem>>, %arg4: memref<32x96xf32, #tpu.memory_space<vmem>>, %arg5: memref<16x96xf32, #tpu.memory_space<vmem>>, %arg6: memref<16x96xf32, #tpu.memory_space<vmem>>) attributes {dimension_semantics = [#tpu.dimension_semantics<parallel>, #tpu.dimension_semantics<parallel>, #tpu.dimension_semantics<arbitrary>], iteration_bounds = array<i64: 1, 1, 1>, scalar_prefetch = 0 : i64, scratch_operands = 1 : i64, tpu.core_type = #tpu.core_type<tc>, window_params = [{transform_indices = @transform_0, window_bounds = array<i64: 16, 32>}, {transform_indices = @transform_1, window_bounds = array<i64: 32, 96>}, {transform_indices = @transform_2, window_bounds = array<i64: 16, 96>}]} {
    %c0_i32 = arith.constant 0 : i32
    %0 = arith.cmpi eq, %arg2, %c0_i32 : i32
    %1 = arith.extui %0 : i1 to i32
    %c0_i32_0 = arith.constant 0 : i32
    %2 = arith.cmpi ne, %1, %c0_i32_0 : i32
    scf.if %2 {
      %cst_10 = arith.constant 0.000000e+00 : f32
      %12 = vector.broadcast %cst_10 : f32 to vector<16x96xf32>
      %c0_11 = arith.constant 0 : index
      %c0_12 = arith.constant 0 : index
      %13 = vector.load %arg6[%c0_11, %c0_12] : memref<16x96xf32, #tpu.memory_space<vmem>>, vector<16x96xf32>
      tpu.vector_store %arg6[%c0_11, %c0_12], %12 {strides = array<i32>} : memref<16x96xf32, #tpu.memory_space<vmem>>, vector<16x96xf32>,
    } else {
    }
    %c0 = arith.constant 0 : index
    %c0_1 = arith.constant 0 : index
    %3 = vector.load %arg6[%c0, %c0_1] : memref<16x96xf32, #tpu.memory_space<vmem>>, vector<16x96xf32>
    %c0_2 = arith.constant 0 : index
    %c0_3 = arith.constant 0 : index
    %4 = vector.load %arg3[%c0_2, %c0_3] : memref<16x32xf32, #tpu.memory_space<vmem>>, vector<16x32xf32>
    %c0_4 = arith.constant 0 : index
    %c0_5 = arith.constant 0 : index
    %5 = vector.load %arg4[%c0_4, %c0_5] : memref<32x96xf32, #tpu.memory_space<vmem>>, vector<32x96xf32>
    %cst = arith.constant dense<0.000000e+00> : vector<16x96xf32>
    %6 = tpu.matmul %4, %5, %cst {dimension_numbers = #tpu.dot_dimension_numbers<[1], [0], [0], [1], [0, 0, 1, 1], [], []>} : vector<16x32xf32>, vector<32x96xf32>, vector<16x96xf32> -> vector<16x96xf32>
    %7 = arith.addf %3, %6 : vector<16x96xf32>
    %c0_6 = arith.constant 0 : index
    %c0_7 = arith.constant 0 : index
    %8 = vector.load %arg6[%c0_6, %c0_7] : memref<16x96xf32, #tpu.memory_space<vmem>>, vector<16x96xf32>
    tpu.vector_store %arg6[%c0_6, %c0_7], %7 {strides = array<i32>} : memref<16x96xf32, #tpu.memory_space<vmem>>, vector<16x96xf32>,
    %c0_i32_8 = arith.constant 0 : i32
    %9 = arith.cmpi eq, %arg2, %c0_i32_8 : i32
    %10 = arith.extui %9 : i1 to i32
    %c0_i32_9 = arith.constant 0 : i32
    %11 = arith.cmpi ne, %10, %c0_i32_9 : i32
    scf.if %11 {
      %c0_10 = arith.constant 0 : index
      %c0_11 = arith.constant 0 : index
      %12 = vector.load %arg6[%c0_10, %c0_11] : memref<16x96xf32, #tpu.memory_space<vmem>>, vector<16x96xf32>
      %c0_12 = arith.constant 0 : index
      %c0_13 = arith.constant 0 : index
      %13 = vector.load %arg5[%c0_12, %c0_13] : memref<16x96xf32, #tpu.memory_space<vmem>>, vector<16x96xf32>
      tpu.vector_store %arg5[%c0_12, %c0_13], %12 {strides = array<i32>} : memref<16x96xf32, #tpu.memory_space<vmem>>, vector<16x96xf32>,
    } else {
    }
    return
  }
  func.func @transform_0(%arg0: i32, %arg1: i32, %arg2: i32) -> (i32, i32) {
    %c0_i32 = arith.constant 0 : i32
    return %arg0, %arg2 : i32, i32
  }
  func.func @transform_1(%arg0: i32, %arg1: i32, %arg2: i32) -> (i32, i32) {
    %c0_i32 = arith.constant 0 : i32
    return %arg2, %arg1 : i32, i32
  }
  func.func @transform_2(%arg0: i32, %arg1: i32, %arg2: i32) -> (i32, i32) {
    %c0_i32 = arith.constant 0 : i32
    return %arg0, %arg1 : i32, i32
  }
}

</mosaic_0001>

<bundles_post_ra>
// kernel: tpu_custom_call.1
= control target key start
LH: loop header
LB: loop body
LE: loop exit
PB: predicated region body
PF: predicated region fallthrough
CT: control target
= control target key end

     0   :  { %7 = vsyncpa [#allocation4], 0  ;;  %s256_s0 = inlined_call_operand.hbm [shape: f32[16,32], index: 0, kind: input, shape index: {}]   ;;  %s257_s1 = inlined_call_operand.hbm [shape: f32[32,96], index: 1, kind: input, shape index: {}]   ;;  %s258_s2 = inlined_call_operand.hbm [shape: f32[16,96], index: 2, kind: output, shape index: {}]  }
   0x1   :  { %8 = vsyncpa [#allocation7], 0 }
   0x2   :  { %9 = vsyncpa [#allocation5], 0  ;;  %s14_s11 = sshll.u32 %s256_s0, 4  ;;  %s211_s12 = smov [#allocation3]   ;;  %s15_s11 = int_to_ptr.hbm [resolvable:$true] %s14_s11 }
   0x3   :  { %s16_s13 = sshll.u32 %s211_s12, 4  ;;  %s27_s16 = sshll.u32 %s257_s1, 4  ;;  %s17_s13 = int_to_ptr.vmem [resolvable:$true] %s16_s13  ;;  %s28_s16 = int_to_ptr.hbm [resolvable:$true] %s27_s16 }
   0x4   :  { %s212_s17 = smov 128   ;;  %s213_s18 = smov 8  }
   0x5   :  { %22 = dma.hbm_to_vmem [thread:$0]  %s15_s11, 256, %s17_s13, [#allocation4], %s212_s17, %s212_s17, %s213_s18  }
   0x6   :  { %s214_s19 = smov [#allocation6]  }
   0x7   :  { %s29_s20 = sshll.u32 %s214_s19, 4  ;;  %s30_s20 = int_to_ptr.vmem [resolvable:$true] %s29_s20 }
   0x8   :  { %35 = dma.hbm_to_vmem [thread:$0]  %s28_s16, 512, %s30_s20, [#allocation7], %s212_s17, %s212_s17, %s213_s18  }
   0x9   :  { %205 = dma.done.wait [#allocation4], 256  }
   0xa   :  { %206 = vsyncadd [#allocation4], 4294967040 }
   0xb   :  { %207 = dma.done.wait [#allocation7], 512  }
   0xc   :  { %208 = vsyncadd [#allocation7], 4294966784  ;;  %vm48_vm0 = vcmask 785408   ;;  %v215_v0 = vmov 0.0   ;;  %v58_v1 = vld [vmem:[#allocation6 + $0x18] sm:$0xff]  ;;  %v57_v2 = vld [vmem:[#allocation6 + $0x10] sm:$0xff] }
   0xd   :  { %49 = vst.msk [vmem:[#allocation2] sm:$0xff] %vm48_vm0, %v215_v0  ;;  %78 = vmatpush.msra.mxu0 %v58_v1  ;;  %123 = vmatpush.msra.mxu1 %v58_v1  ;;  %v56_v3 = vld [vmem:[#allocation6 + $0x8] sm:$0xff]  ;;  %v55_v4 = vld [vmem:[#allocation6] sm:$0xff]  ;;  %v53_v5 = vld [vmem:[#allocation3] sm:$0xff]  ;;  %vm59_vm1 = vcmask 261120   ;;  %s216_s0 = smov [#allocation8]  }
   0xe   :  { %50 = vst.msk [vmem:[#allocation2 + $0x8] sm:$0xff] %vm48_vm0, %v215_v0  ;;  %v54_v6 = vld [vmem:[#allocation3 + $0x8] sm:$0xff]  ;;  %s105_s1 = sshll.u32 %s216_s0, 4  ;;  %s107_s23 = sshll.u32 %s258_s2, 4  ;;  %s106_s1 = int_to_ptr.vmem [resolvable:$true] %s105_s1  ;;  %s108_s23 = int_to_ptr.hbm [resolvable:$true] %s107_s23 }
   0xf   :  { %79 = vmatpush.msra.mxu0 %v57_v2  ;;  %124 = vmatpush.msra.mxu1 %v57_v2 }
  0x11   :  { %80 = vmatpush.msra.mxu0 %v56_v3  ;;  %125 = vmatpush.msra.mxu1 %v56_v3 }
  0x13   :  { %81 = vmatpush.msra.mxu0 %v55_v4  ;;  %126 = vmatpush.msra.mxu1 %v55_v4 }
  0x14   :  { %121 = vmatmul.msk.f32.vlgmr.msra.gmra.mxu0 %vm59_vm1, %v53_v5  ;;  %122 = vmatmul.msk.f32.vlgmr.msra.gmra.mxu1 %vm59_vm1, %v54_v6  ;;  %v51_v7 = vld [vmem:[#allocation2] sm:$0xff] }
  0x15   :  { %v52_v8 = vld [vmem:[#allocation2 + $0x8] sm:$0xff] }
  0x91   :  { %v83_v9 = vpop.f32.mrf.mxu0  ;;  %v86_v10 = vpop.f32.mrf.mxu1 }
  0x92   :  { %v89_v11 = vadd.f32 %v83_v9, %v51_v7  ;;  %v90_v12 = vadd.f32 %v86_v10, %v52_v8 }
  0x94   :  { %92 = vst.msk [vmem:[#allocation2] sm:$0xff] %vm48_vm0, %v89_v11 }
  0x95   :  { %93 = vst.msk [vmem:[#allocation2 + $0x8] sm:$0xff] %vm48_vm0, %v90_v12 }
  0x9b   :  { %v97_v13 = vld [vmem:[#allocation2] sm:$0xff] }
  0x9c   :  { %v98_v14 = vld [vmem:[#allocation2 + $0x8] sm:$0xff]  ;;  %99 = vst.msk [vmem:[#allocation8] sm:$0xff] %vm48_vm0, %v97_v13 }
  0x9d   :  { %100 = vst.msk [vmem:[#allocation8 + $0x8] sm:$0xff] %vm48_vm0, %v98_v14 }
  0x9e   :  { %113 = dma.vmem_to_hbm [thread:$0]  %s106_s1, 256, %s108_s23, [#allocation5], %s212_s17, %s212_s17, %s213_s18  }
  0x9f   :  { %209 = dma.done.wait [#allocation5], 256  }
  0xa0   :  { %210 = vsyncadd [#allocation5], 4294967040 }
  0xa1   :  { %118 = vsyncpa [#allocation4], 1 }
  0xa2   :  { %119 = vsyncpa [#allocation7], 1 }
  0xa3   :  { %120 = vsyncpa [#allocation5], 1 }

</bundles_post_ra>
